<compile_context>
chip_gen: v7x
topology: tpu7x:2x2x1
jax: 0.10.0
libtpu: 0.0.40
codegen_flags: <defaults>
</compile_context>

<pallas_src>
import functools

import jax
import jax.numpy as jnp
from jax.experimental import pallas as pl
from jax.experimental.pallas import tpu as pltpu


def _round_up(n, m):
    return ((n + m - 1) // m) * m


def _sigmoid(z):
    # Explicit formulation: exp on the EUP, guaranteed Mosaic lowering.
    return 1.0 / (1.0 + jnp.exp(-z))


def lstm_cell_kernel(x_ref, h0_ref, c0_ref, wih_ref, whh_ref, b_ref,
                     out_ref, h_ref, c_ref):
    """One LSTM step for a (TB, feature) batch tile. Features pre-padded to 128."""
    x = x_ref[...]
    h0 = h0_ref[...]
    c0 = c0_ref[...]

    hp = h0_ref.shape[-1]  # padded hidden width (multiple of 128), static

    # (TB, 4*Hp) gate pre-activations, f32 accumulation on the MXU.
    gates = (jnp.dot(x, wih_ref[...], preferred_element_type=jnp.float32)
             + jnp.dot(h0, whh_ref[...], preferred_element_type=jnp.float32)
             + b_ref[...])

    i_g = _sigmoid(gates[:, 0 * hp:1 * hp])
    f_g = _sigmoid(gates[:, 1 * hp:2 * hp])
    g_g = jnp.tanh(gates[:, 2 * hp:3 * hp])
    o_g = _sigmoid(gates[:, 3 * hp:4 * hp])

    c_new = f_g * c0 + i_g * g_g
    h_new = o_g * jnp.tanh(c_new)

    h_ref[...] = h_new.astype(h_ref.dtype)
    c_ref[...] = c_new.astype(c_ref.dtype)
    out_ref[...] = jnp.tanh(h_new).astype(out_ref.dtype)   # tanh(lstm_state)


@functools.partial(jax.jit, static_argnames=("block_batch",))
def lstm_forward(x, h0, c0, kernel_params, block_batch=512):
    """x: (batch, input_dims); h0, c0: (batch, lstm_dims).

    Returns (tanh(h'), (h', c')) with h', c' shaped (1, batch, lstm_dims),
    matching the PyTorch module's outputs.
    """
    w_ih, w_hh, b = kernel_params      # padded layouts: (Dp,4Hp), (Hp,4Hp), (1,4Hp)
    batch, d = x.shape
    hid = h0.shape[-1]
    dp = w_ih.shape[0]
    hp = w_hh.shape[0]

    # Batch tile: as large as requested, at least one 8-sublane-aligned tile.
    tb = min(block_batch, _round_up(batch, 8))
    padded_batch = _round_up(batch, tb)

    f32 = jnp.float32
    xp = jnp.pad(x.astype(f32), ((0, padded_batch - batch), (0, dp - d)))
    h0p = jnp.pad(h0.astype(f32), ((0, padded_batch - batch), (0, hp - hid)))
    c0p = jnp.pad(c0.astype(f32), ((0, padded_batch - batch), (0, hp - hid)))

    grid = (padded_batch // tb,)

    batch_spec_x = pl.BlockSpec((tb, dp), lambda i: (i, 0))
    batch_spec_h = pl.BlockSpec((tb, hp), lambda i: (i, 0))
    # Weights/bias: constant block index -> DMA'd once, resident across tiles.
    wih_spec = pl.BlockSpec((dp, 4 * hp), lambda i: (0, 0))
    whh_spec = pl.BlockSpec((hp, 4 * hp), lambda i: (0, 0))
    b_spec = pl.BlockSpec((1, 4 * hp), lambda i: (0, 0))

    out, h_new, c_new = pl.pallas_call(
        lstm_cell_kernel,
        out_shape=(
            jax.ShapeDtypeStruct((padded_batch, hp), f32),
            jax.ShapeDtypeStruct((padded_batch, hp), f32),
            jax.ShapeDtypeStruct((padded_batch, hp), f32),
        ),
        grid=grid,
        in_specs=[batch_spec_x, batch_spec_h, batch_spec_h,
                  wih_spec, whh_spec, b_spec],
        out_specs=(batch_spec_h, batch_spec_h, batch_spec_h),
        compiler_params=pltpu.CompilerParams(
            dimension_semantics=("parallel",),
        ),
    )(xp, h0p, c0p, w_ih, w_hh, b)

    out = out[:batch, :hid]
    h_new = h_new[:batch, :hid].reshape(1, batch, hid)
    c_new = c_new[:batch, :hid].reshape(1, batch, hid)
    return out, (h_new, c_new)


def init_lstm_params(key, input_dims, lstm_dims):
    """Raw PyTorch-layout nn.LSTM params: uniform(-1/sqrt(H), 1/sqrt(H))."""
    k1, k2, k3, k4 = jax.random.split(key, 4)
    bound = 1.0 / jnp.sqrt(jnp.float32(lstm_dims))
    w_ih = jax.random.uniform(k1, (4 * lstm_dims, input_dims), jnp.float32, -bound, bound)
    w_hh = jax.random.uniform(k2, (4 * lstm_dims, lstm_dims), jnp.float32, -bound, bound)
    b_ih = jax.random.uniform(k3, (4 * lstm_dims,), jnp.float32, -bound, bound)
    b_hh = jax.random.uniform(k4, (4 * lstm_dims,), jnp.float32, -bound, bound)
    return (w_ih, w_hh, b_ih, b_hh)


def prepare_kernel_params(raw_params, input_dims, lstm_dims):
    """Transpose to (in, 4H), fuse biases, and zero-pad each gate block to
    (Dp, 4*Hp)/(Hp, 4*Hp)/(1, 4*Hp) with Dp, Hp multiples of 128 (lane-dense)."""
    w_ih, w_hh, b_ih, b_hh = raw_params
    d, h = input_dims, lstm_dims
    dp = _round_up(d, 128)
    hp = _round_up(h, 128)

    wih_t = jnp.transpose(w_ih).reshape(d, 4, h)        # (D, 4, H), gate order i,f,g,o
    whh_t = jnp.transpose(w_hh).reshape(h, 4, h)
    b = (b_ih + b_hh).reshape(4, h)

    wih_p = jnp.zeros((dp, 4, hp), jnp.float32).at[:d, :, :h].set(wih_t).reshape(dp, 4 * hp)
    whh_p = jnp.zeros((hp, 4, hp), jnp.float32).at[:h, :, :h].set(whh_t).reshape(hp, 4 * hp)
    b_p = jnp.zeros((1, 4, hp), jnp.float32).at[0, :, :h].set(b).reshape(1, 4 * hp)
    return (wih_p, whh_p, b_p)


def lstm_forward_ref(x, h0, c0, raw_params):
    """Pure-JAX reference (PyTorch LSTM cell semantics, seq_len = 1)."""
    w_ih, w_hh, b_ih, b_hh = raw_params
    hid = h0.shape[-1]
    gates = x @ w_ih.T + b_ih + h0 @ w_hh.T + b_hh
    i_g = _sigmoid(gates[:, 0 * hid:1 * hid])
    f_g = _sigmoid(gates[:, 1 * hid:2 * hid])
    g_g = jnp.tanh(gates[:, 2 * hid:3 * hid])
    o_g = _sigmoid(gates[:, 3 * hid:4 * hid])
    c_new = f_g * c0 + i_g * g_g
    h_new = o_g * jnp.tanh(c_new)
    batch = x.shape[0]
    return jnp.tanh(h_new), (h_new.reshape(1, batch, hid), c_new.reshape(1, batch, hid))


if __name__ == "__main__":
    # Small shapes consistent with the module's forward (seq_len folds to 1).
    batch, input_dims, lstm_dims = 2, 16, 32

    key = jax.random.PRNGKey(0)
    k_params, k_x, k_h, k_c = jax.random.split(key, 4)

    raw_params = init_lstm_params(k_params, input_dims, lstm_dims)
    kernel_params = prepare_kernel_params(raw_params, input_dims, lstm_dims)

    x = jax.random.normal(k_x, (batch, input_dims), jnp.float32)
    h0 = jax.random.normal(k_h, (batch, lstm_dims), jnp.float32)
    c0 = jax.random.normal(k_c, (batch, lstm_dims), jnp.float32)

    out, (h_new, c_new) = lstm_forward(x, h0, c0, kernel_params)
    out = jax.block_until_ready(out)
    h_new = jax.block_until_ready(h_new)
    c_new = jax.block_until_ready(c_new)

    out_ref, (h_ref, c_ref) = lstm_forward_ref(x, h0, c0, raw_params)

    assert out.shape == (batch, lstm_dims)
    assert h_new.shape == (1, batch, lstm_dims)
    assert c_new.shape == (1, batch, lstm_dims)
    assert jnp.allclose(out, out_ref, atol=1e-5, rtol=1e-5), "output mismatch"
    assert jnp.allclose(h_new, h_ref, atol=1e-5, rtol=1e-5), "h mismatch"
    assert jnp.allclose(c_new, c_ref, atol=1e-5, rtol=1e-5), "c mismatch"

    print("KERNEL_OK")
</pallas_src>

<mosaic_0001>
module attributes {stable_mosaic.version = 11 : i64} {
  func.func @lstm_cell_kernel(%arg0: i32, %arg1: memref<8x128xf32, #tpu.memory_space<vmem>>, %arg2: memref<8x128xf32, #tpu.memory_space<vmem>>, %arg3: memref<8x128xf32, #tpu.memory_space<vmem>>, %arg4: memref<128x512xf32, #tpu.memory_space<vmem>>, %arg5: memref<128x512xf32, #tpu.memory_space<vmem>>, %arg6: memref<1x512xf32, #tpu.memory_space<vmem>>, %arg7: memref<8x128xf32, #tpu.memory_space<vmem>>, %arg8: memref<8x128xf32, #tpu.memory_space<vmem>>, %arg9: memref<8x128xf32, #tpu.memory_space<vmem>>) attributes {dimension_semantics = [#tpu.dimension_semantics<parallel>], iteration_bounds = array<i64: 1>, scalar_prefetch = 0 : i64, scratch_operands = 0 : i64, tpu.core_type = #tpu.core_type<tc>, window_params = [{transform_indices = @transform_0, window_bounds = array<i64: 8, 128>}, {transform_indices = @transform_1, window_bounds = array<i64: 8, 128>}, {transform_indices = @transform_2, window_bounds = array<i64: 8, 128>}, {pipeline_mode = #tpu.pipeline_mode<synchronous>, transform_indices = @transform_3, window_bounds = array<i64: 128, 512>}, {pipeline_mode = #tpu.pipeline_mode<synchronous>, transform_indices = @transform_4, window_bounds = array<i64: 128, 512>}, {pipeline_mode = #tpu.pipeline_mode<synchronous>, transform_indices = @transform_5, window_bounds = array<i64: 1, 512>}, {transform_indices = @transform_6, window_bounds = array<i64: 8, 128>}, {transform_indices = @transform_7, window_bounds = array<i64: 8, 128>}, {transform_indices = @transform_8, window_bounds = array<i64: 8, 128>}]} {
    %c0 = arith.constant 0 : index
    %c0_0 = arith.constant 0 : index
    %0 = vector.load %arg1[%c0, %c0_0] : memref<8x128xf32, #tpu.memory_space<vmem>>, vector<8x128xf32>
    %c0_1 = arith.constant 0 : index
    %c0_2 = arith.constant 0 : index
    %1 = vector.load %arg2[%c0_1, %c0_2] : memref<8x128xf32, #tpu.memory_space<vmem>>, vector<8x128xf32>
    %c0_3 = arith.constant 0 : index
    %c0_4 = arith.constant 0 : index
    %2 = vector.load %arg3[%c0_3, %c0_4] : memref<8x128xf32, #tpu.memory_space<vmem>>, vector<8x128xf32>
    %c0_5 = arith.constant 0 : index
    %c0_6 = arith.constant 0 : index
    %3 = vector.load %arg4[%c0_5, %c0_6] : memref<128x512xf32, #tpu.memory_space<vmem>>, vector<128x512xf32>
    %cst = arith.constant dense<0.000000e+00> : vector<8x512xf32>
    %4 = tpu.matmul %0, %3, %cst {dimension_numbers = #tpu.dot_dimension_numbers<[1], [0], [0], [1], [0, 0, 1, 1], [], []>} : vector<8x128xf32>, vector<128x512xf32>, vector<8x512xf32> -> vector<8x512xf32>
    %c0_7 = arith.constant 0 : index
    %c0_8 = arith.constant 0 : index
    %5 = vector.load %arg5[%c0_7, %c0_8] : memref<128x512xf32, #tpu.memory_space<vmem>>, vector<128x512xf32>
    %cst_9 = arith.constant dense<0.000000e+00> : vector<8x512xf32>
    %6 = tpu.matmul %1, %5, %cst_9 {dimension_numbers = #tpu.dot_dimension_numbers<[1], [0], [0], [1], [0, 0, 1, 1], [], []>} : vector<8x128xf32>, vector<128x512xf32>, vector<8x512xf32> -> vector<8x512xf32>
    %7 = arith.addf %4, %6 : vector<8x512xf32>
    %c0_10 = arith.constant 0 : index
    %c0_11 = arith.constant 0 : index
    %8 = vector.load %arg6[%c0_10, %c0_11] : memref<1x512xf32, #tpu.memory_space<vmem>>, vector<1x512xf32>
    %9 = vector.broadcast %8 : vector<1x512xf32> to vector<8x512xf32>
    %10 = arith.addf %7, %9 : vector<8x512xf32>
    %11 = vector.extract_strided_slice %10 {offsets = [0, 0], sizes = [8, 128], strides = [1, 1]} : vector<8x512xf32> to vector<8x128xf32>
    %cst_12 = arith.constant 0.000000e+00 : f32
    %12 = vector.broadcast %cst_12 : f32 to vector<8x128xf32>
    %13 = arith.subf %12, %11 : vector<8x128xf32>
    %14 = math.exp %13 : vector<8x128xf32>
    %cst_13 = arith.constant 1.000000e+00 : f32
    %15 = vector.broadcast %cst_13 : f32 to vector<8x128xf32>
    %16 = arith.addf %15, %14 : vector<8x128xf32>
    %cst_14 = arith.constant 1.000000e+00 : f32
    %17 = vector.broadcast %cst_14 : f32 to vector<8x128xf32>
    %18 = arith.divf %17, %16 : vector<8x128xf32>
    %19 = vector.extract_strided_slice %10 {offsets = [0, 128], sizes = [8, 128], strides = [1, 1]} : vector<8x512xf32> to vector<8x128xf32>
    %cst_15 = arith.constant 0.000000e+00 : f32
    %20 = vector.broadcast %cst_15 : f32 to vector<8x128xf32>
    %21 = arith.subf %20, %19 : vector<8x128xf32>
    %22 = math.exp %21 : vector<8x128xf32>
    %cst_16 = arith.constant 1.000000e+00 : f32
    %23 = vector.broadcast %cst_16 : f32 to vector<8x128xf32>
    %24 = arith.addf %23, %22 : vector<8x128xf32>
    %cst_17 = arith.constant 1.000000e+00 : f32
    %25 = vector.broadcast %cst_17 : f32 to vector<8x128xf32>
    %26 = arith.divf %25, %24 : vector<8x128xf32>
    %27 = vector.extract_strided_slice %10 {offsets = [0, 256], sizes = [8, 128], strides = [1, 1]} : vector<8x512xf32> to vector<8x128xf32>
    %28 = math.tanh %27 : vector<8x128xf32>
    %29 = vector.extract_strided_slice %10 {offsets = [0, 384], sizes = [8, 128], strides = [1, 1]} : vector<8x512xf32> to vector<8x128xf32>
    %cst_18 = arith.constant 0.000000e+00 : f32
    %30 = vector.broadcast %cst_18 : f32 to vector<8x128xf32>
    %31 = arith.subf %30, %29 : vector<8x128xf32>
    %32 = math.exp %31 : vector<8x128xf32>
    %cst_19 = arith.constant 1.000000e+00 : f32
    %33 = vector.broadcast %cst_19 : f32 to vector<8x128xf32>
    %34 = arith.addf %33, %32 : vector<8x128xf32>
    %cst_20 = arith.constant 1.000000e+00 : f32
    %35 = vector.broadcast %cst_20 : f32 to vector<8x128xf32>
    %36 = arith.divf %35, %34 : vector<8x128xf32>
    %37 = arith.mulf %26, %2 : vector<8x128xf32>
    %38 = arith.mulf %18, %28 : vector<8x128xf32>
    %39 = arith.addf %37, %38 : vector<8x128xf32>
    %40 = math.tanh %39 : vector<8x128xf32>
    %41 = arith.mulf %36, %40 : vector<8x128xf32>
    %c0_21 = arith.constant 0 : index
    %c0_22 = arith.constant 0 : index
    %42 = vector.load %arg8[%c0_21, %c0_22] : memref<8x128xf32, #tpu.memory_space<vmem>>, vector<8x128xf32>
    tpu.vector_store %arg8[%c0_21, %c0_22], %41 {strides = array<i32>} : memref<8x128xf32, #tpu.memory_space<vmem>>, vector<8x128xf32>,
    %c0_23 = arith.constant 0 : index
    %c0_24 = arith.constant 0 : index
    %43 = vector.load %arg9[%c0_23, %c0_24] : memref<8x128xf32, #tpu.memory_space<vmem>>, vector<8x128xf32>
    tpu.vector_store %arg9[%c0_23, %c0_24], %39 {strides = array<i32>} : memref<8x128xf32, #tpu.memory_space<vmem>>, vector<8x128xf32>,
    %44 = math.tanh %41 : vector<8x128xf32>
    %c0_25 = arith.constant 0 : index
    %c0_26 = arith.constant 0 : index
    %45 = vector.load %arg7[%c0_25, %c0_26] : memref<8x128xf32, #tpu.memory_space<vmem>>, vector<8x128xf32>
    tpu.vector_store %arg7[%c0_25, %c0_26], %44 {strides = array<i32>} : memref<8x128xf32, #tpu.memory_space<vmem>>, vector<8x128xf32>,
    return
  }
  func.func @transform_0(%arg0: i32) -> (i32, i32) {
    %c0_i32 = arith.constant 0 : i32
    %c0_i32_0 = arith.constant 0 : i32
    return %arg0, %c0_i32 : i32, i32
  }
  func.func @transform_1(%arg0: i32) -> (i32, i32) {
    %c0_i32 = arith.constant 0 : i32
    %c0_i32_0 = arith.constant 0 : i32
    return %arg0, %c0_i32 : i32, i32
  }
  func.func @transform_2(%arg0: i32) -> (i32, i32) {
    %c0_i32 = arith.constant 0 : i32
    %c0_i32_0 = arith.constant 0 : i32
    return %arg0, %c0_i32 : i32, i32
  }
  func.func @transform_3(%arg0: i32) -> (i32, i32) {
    %c0_i32 = arith.constant 0 : i32
    %c0_i32_0 = arith.constant 0 : i32
    %c0_i32_1 = arith.constant 0 : i32
    return %c0_i32, %c0_i32_0 : i32, i32
  }
  func.func @transform_4(%arg0: i32) -> (i32, i32) {
    %c0_i32 = arith.constant 0 : i32
    %c0_i32_0 = arith.constant 0 : i32
    %c0_i32_1 = arith.constant 0 : i32
    return %c0_i32, %c0_i32_0 : i32, i32
  }
  func.func @transform_5(%arg0: i32) -> (i32, i32) {
    %c0_i32 = arith.constant 0 : i32
    %c0_i32_0 = arith.constant 0 : i32
    %c0_i32_1 = arith.constant 0 : i32
    return %c0_i32, %c0_i32_0 : i32, i32
  }
  func.func @transform_6(%arg0: i32) -> (i32, i32) {
    %c0_i32 = arith.constant 0 : i32
    %c0_i32_0 = arith.constant 0 : i32
    return %arg0, %c0_i32 : i32, i32
  }
  func.func @transform_7(%arg0: i32) -> (i32, i32) {
    %c0_i32 = arith.constant 0 : i32
    %c0_i32_0 = arith.constant 0 : i32
    return %arg0, %c0_i32 : i32, i32
  }
  func.func @transform_8(%arg0: i32) -> (i32, i32) {
    %c0_i32 = arith.constant 0 : i32
    %c0_i32_0 = arith.constant 0 : i32
    return %arg0, %c0_i32 : i32, i32
  }
}

</mosaic_0001>

<bundles_post_ra>
// kernel: lstm_forward.1
= control target key start
LH: loop header
LB: loop body
LE: loop exit
PB: predicated region body
PF: predicated region fallthrough
CT: control target
= control target key end

     0   :  { %14 = vsyncpa [#allocation3], 0  ;;  %s839_s0 = inlined_call_operand.vmem [shape: f32[8,128], index: 0, kind: input, shape index: {}]   ;;  %s840_s1 = inlined_call_operand.vmem [shape: f32[8,128], index: 1, kind: input, shape index: {}]   ;;  %s841_s2 = inlined_call_operand.vmem [shape: f32[8,128], index: 2, kind: input, shape index: {}]   ;;  %s842_s3 = inlined_call_operand.hbm [shape: f32[128,512], index: 3, kind: input, shape index: {}]   ;;  %s843_s4 = inlined_call_operand.hbm [shape: f32[128,512], index: 4, kind: input, shape index: {}]   ;;  %s844_s5 = inlined_call_operand.vmem [shape: f32[1,512], index: 5, kind: input, shape index: {}]   ;;  %s845_s6 = inlined_call_operand.vmem [shape: f32[8,128], index: 6, kind: output, shape index: {0}]   ;;  %s846_s7 = inlined_call_operand.vmem [shape: f32[8,128], index: 7, kind: output, shape index: {1}]   ;;  %s847_s8 = inlined_call_operand.vmem [shape: f32[8,128], index: 8, kind: output, shape index: {2}]  }
   0x1   :  { %15 = vsyncpa [#allocation5], 0  ;;  %s740_s27 = smov [#allocation2]   ;;  %s692_s9 = scalar_lea.hbm %s842_s3, 8192 }
   0x2   :  { %s27_s28 = sshll.u32 %s740_s27, 4  ;;  %p693_p0 = scmp.ne.s32.totalorder %s842_s3, %s692_s9  ;;  %s28_s28 = int_to_ptr.vmem [resolvable:$true] %s27_s28 }
   0x3   :  { %p696_p1 = scmp.lt.u32.totalorder %s692_s9, %s842_s3 }
   0x5   :  { %p698_p2 = pnand %p696_p1, %p693_p0 }
   0x7   :  { %701 = shalt.err (!%p698_p2)
}
   0x8   :  { %s702_s14 = scalar_lea.vmem %s28_s28, 8192  ;;  %p707_p4 = scmp.lt.s32.totalorder %s28_s28, %s28_s28 }
   0x9   :  { %p703_p3 = scmp.ne.s32.totalorder %s28_s28, %s702_s14  ;;  %p708_p5 = scmp.lt.s32.totalorder %s702_s14, %s702_s14 }
   0xb   :  { %p709_p6 = por %p708_p5, %p707_p4 }
   0xd   :  { %p710_p7 = pnand %p709_p6, %p703_p3 }
   0xf   :  { %713 = shalt.err (!%p710_p7)
}
  0x10   :  { %s741_s15 = smov 512   ;;  %s742_s16 = smov 32  }
  0x11   :  { %33 = dma.hbm_to_vmem [thread:$0]  %s842_s3, 8192, %s28_s28, [#allocation3], %s741_s15, %s741_s15, %s742_s16  }
  0x12   :  { %s743_s19 = smov [#allocation4]   ;;  %s714_s23 = scalar_lea.hbm %s843_s4, 8192 }
  0x13   :  { %s39_s20 = sshll.u32 %s743_s19, 4  ;;  %p715_p8 = scmp.ne.s32.totalorder %s843_s4, %s714_s23  ;;  %s40_s20 = int_to_ptr.vmem [resolvable:$true] %s39_s20 }
  0x14   :  { %p718_p9 = scmp.lt.u32.totalorder %s714_s23, %s843_s4 }
  0x16   :  { %p720_p10 = pnand %p718_p9, %p715_p8 }
  0x18   :  { %723 = shalt.err (!%p720_p10)
}
  0x19   :  { %s724_s29 = scalar_lea.vmem %s40_s20, 8192  ;;  %p729_p12 = scmp.lt.s32.totalorder %s40_s20, %s40_s20 }
  0x1a   :  { %p725_p11 = scmp.ne.s32.totalorder %s40_s20, %s724_s29  ;;  %p730_p13 = scmp.lt.s32.totalorder %s724_s29, %s724_s29 }
  0x1c   :  { %p731_p0 = por %p730_p13, %p729_p12 }
  0x1e   :  { %p732_p1 = pnand %p731_p0, %p725_p11 }
  0x20   :  { %735 = shalt.err (!%p732_p1)
}
  0x21   :  { %45 = dma.hbm_to_vmem [thread:$0]  %s843_s4, 8192, %s40_s20, [#allocation5], %s741_s15, %s741_s15, %s742_s16  }
  0x22   :  { %736 = dma.done.wait [#allocation3], 8192  }
  0x23   :  { %737 = vsyncadd [#allocation3], 4294959104 }
  0x24   :  { %738 = dma.done.wait [#allocation5], 8192  }
  0x25   :  { %739 = vsyncadd [#allocation5], 4294959104  ;;  %v744_v0 = vmov 0.0   ;;  %v122_v1 = vld [vmem:[#allocation4 + $0x8] sm:$0xff]  ;;  %v124_v3 = vld [vmem:[#allocation4 + $0x18] sm:$0xff] }
  0x26   :  { %249 = vmatprep.mubr.f32.mxu0 %v744_v0  ;;  %320 = vmatprep.mubr.f32.mxu1 %v744_v0  ;;  %v126_v2 = vld [vmem:[#allocation4 + $0x28] sm:$0xff]  ;;  %v128_v5 = vld [vmem:[#allocation4 + $0x38] sm:$0xff]  ;;  %v121_v6 = vld [vmem:[#allocation4] sm:$0xff] }
  0x27   :  { %v537_v4 = vpack.c.bf16 %v126_v2, %v122_v1  ;;  %v125_v7 = vld [vmem:[#allocation4 + $0x20] sm:$0xff]  ;;  %v569_v8 = vpack.c.bf16 %v128_v5, %v124_v3  ;;  %v123_v10 = vld [vmem:[#allocation4 + $0x10] sm:$0xff]  ;;  %v130_v12 = vld [vmem:[#allocation4 + $0x48] sm:$0xff] }
  0x28   :  { %v539_v9 = vpack.c.bf16 %v125_v7, %v121_v6  ;;  %v127_v11 = vld [vmem:[#allocation4 + $0x30] sm:$0xff]  ;;  %v134_v14 = vld [vmem:[#allocation4 + $0x68] sm:$0xff]  ;;  %v132_v15 = vld [vmem:[#allocation4 + $0x58] sm:$0xff] }
  0x29   :  { %538 = vmatprep.subr.bf16.mxu0 %v537_v4  ;;  %v571_v13 = vpack.c.bf16 %v127_v11, %v123_v10  ;;  %v136_v16 = vld [vmem:[#allocation4 + $0x78] sm:$0xff]  ;;  %570 = vmatprep.subr.bf16.mxu1 %v569_v8  ;;  %v541_v17 = vpack.c.bf16 %v134_v14, %v130_v12  ;;  %v129_v19 = vld [vmem:[#allocation4 + $0x40] sm:$0xff]  ;;  %v131_v21 = vld [vmem:[#allocation4 + $0x50] sm:$0xff] }
  0x2a   :  { %540 = vmatpush1.bf16.msra.mxu0 %v539_v9  ;;  %v573_v18 = vpack.c.bf16 %v136_v16, %v132_v15  ;;  %v133_v20 = vld [vmem:[#allocation4 + $0x60] sm:$0xff]  ;;  %v135_v23 = vld [vmem:[#allocation4 + $0x70] sm:$0xff]  ;;  %v138_v24 = vld [vmem:[#allocation4 + $0x88] sm:$0xff] }
  0x2b   :  { %572 = vmatpush1.bf16.msra.mxu1 %v571_v13  ;;  %v543_v22 = vpack.c.bf16 %v133_v20, %v129_v19  ;;  %v142_v25 = vld [vmem:[#allocation4 + $0xa8] sm:$0xff]  ;;  %542 = vmatprep.subr.bf16.mxu0 %v541_v17  ;;  %v575_v26 = vpack.c.bf16 %v135_v23, %v131_v21  ;;  %v140_v28 = vld [vmem:[#allocation4 + $0x98] sm:$0xff]  ;;  %v137_v30 = vld [vmem:[#allocation4 + $0x80] sm:$0xff] }
  0x2c   :  { %574 = vmatprep.subr.bf16.mxu1 %v573_v18  ;;  %v545_v27 = vpack.c.bf16 %v142_v25, %v138_v24  ;;  %v144_v29 = vld [vmem:[#allocation4 + $0xb8] sm:$0xff]  ;;  %v141_v32 = vld [vmem:[#allocation4 + $0xa0] sm:$0xff]  ;;  %v139_v33 = vld [vmem:[#allocation4 + $0x90] sm:$0xff] }
  0x2d   :  { %v577_v31 = vpack.c.bf16 %v144_v29, %v140_v28  ;;  %v143_v34 = vld [vmem:[#allocation4 + $0xb0] sm:$0xff]  ;;  %v547_v35 = vpack.c.bf16 %v141_v32, %v137_v30  ;;  %v146_v36 = vld [vmem:[#allocation4 + $0xc8] sm:$0xff]  ;;  %v148_v38 = vld [vmem:[#allocation4 + $0xd8] sm:$0xff] }
  0x2e   :  { %544 = vmatpush1.bf16.msra.mxu0 %v543_v22  ;;  %v150_v37 = vld [vmem:[#allocation4 + $0xe8] sm:$0xff]  ;;  %v579_v39 = vpack.c.bf16 %v143_v34, %v139_v33  ;;  %v152_v41 = vld [vmem:[#allocation4 + $0xf8] sm:$0xff]  ;;  %v145_v42 = vld [vmem:[#allocation4 + $0xc0] sm:$0xff] }
  0x2f   :  { %576 = vmatpush1.bf16.msra.mxu1 %v575_v26  ;;  %546 = vmatprep.subr.bf16.mxu0 %v545_v27  ;;  %v549_v40 = vpack.c.bf16 %v150_v37, %v146_v36  ;;  %v149_v43 = vld [vmem:[#allocation4 + $0xe0] sm:$0xff]  ;;  %v581_v44 = vpack.c.bf16 %v152_v41, %v148_v38  ;;  %v147_v45 = vld [vmem:[#allocation4 + $0xd0] sm:$0xff]  ;;  %v154_v47 = vld [vmem:[#allocation4 + $0x108] sm:$0xff] }
  0x30   :  { %578 = vmatprep.subr.bf16.mxu1 %v577_v31  ;;  %v151_v46 = vld [vmem:[#allocation4 + $0xf0] sm:$0xff]  ;;  %v158_v48 = vld [vmem:[#allocation4 + $0x128] sm:$0xff]  ;;  %v156_v49 = vld [vmem:[#allocation4 + $0x118] sm:$0xff]  ;;  %v551_v51 = vpack.c.bf16 %v149_v43, %v145_v42 }
  0x31   :  { %v160_v50 = vld [vmem:[#allocation4 + $0x138] sm:$0xff]  ;;  %v583_v52 = vpack.c.bf16 %v151_v46, %v147_v45  ;;  %v553_v53 = vpack.c.bf16 %v158_v48, %v154_v47  ;;  %v153_v54 = vld [vmem:[#allocation4 + $0x100] sm:$0xff]  ;;  %v155_v56 = vld [vmem:[#allocation4 + $0x110] sm:$0xff] }
  0x32   :  { %548 = vmatpush1.bf16.msra.mxu0 %v547_v35  ;;  %v157_v55 = vld [vmem:[#allocation4 + $0x120] sm:$0xff]  ;;  %v585_v57 = vpack.c.bf16 %v160_v50, %v156_v49  ;;  %v159_v58 = vld [vmem:[#allocation4 + $0x130] sm:$0xff]  ;;  %v162_v59 = vld [vmem:[#allocation4 + $0x148] sm:$0xff] }
  0x33   :  { %580 = vmatpush1.bf16.msra.mxu1 %v579_v39  ;;  %550 = vmatprep.subr.bf16.mxu0 %v549_v40  ;;  %v166_v60 = vld [vmem:[#allocation4 + $0x168] sm:$0xff]  ;;  %v164_v61 = vld [vmem:[#allocation4 + $0x158] sm:$0xff]  ;;  %v555_v63 = vpack.c.bf16 %v157_v55, %v153_v54  ;;  %v587_v1 = vpack.c.bf16 %v159_v58, %v155_v56  ;;  %v161_v3 = vld [vmem:[#allocation4 + $0x140] sm:$0xff] }
  0x34   :  { %582 = vmatprep.subr.bf16.mxu1 %v581_v44  ;;  %v168_v62 = vld [vmem:[#allocation4 + $0x178] sm:$0xff]  ;;  %v557_v2 = vpack.c.bf16 %v166_v60, %v162_v59  ;;  %v165_v4 = vld [vmem:[#allocation4 + $0x160] sm:$0xff]  ;;  %v163_v5 = vld [vmem:[#allocation4 + $0x150] sm:$0xff] }
  0x35   :  { %v589_v6 = vpack.c.bf16 %v168_v62, %v164_v61  ;;  %v167_v7 = vld [vmem:[#allocation4 + $0x170] sm:$0xff]  ;;  %v170_v8 = vld [vmem:[#allocation4 + $0x188] sm:$0xff]  ;;  %v172_v10 = vld [vmem:[#allocation4 + $0x198] sm:$0xff]  ;;  %v559_v12 = vpack.c.bf16 %v165_v4, %v161_v3 }
  0x36   :  { %552 = vmatpush1.bf16.msra.mxu0 %v551_v51  ;;  %v174_v9 = vld [vmem:[#allocation4 + $0x1a8] sm:$0xff]  ;;  %v176_v11 = vld [vmem:[#allocation4 + $0x1b8] sm:$0xff]  ;;  %v591_v13 = vpack.c.bf16 %v167_v7, %v163_v5  ;;  %v169_v15 = vld [vmem:[#allocation4 + $0x180] sm:$0xff] }
  0x37   :  { %584 = vmatpush1.bf16.msra.mxu1 %v583_v52  ;;  %554 = vmatprep.subr.bf16.mxu0 %v553_v53  ;;  %v561_v14 = vpack.c.bf16 %v174_v9, %v170_v8  ;;  %v173_v16 = vld [vmem:[#allocation4 + $0x1a0] sm:$0xff]  ;;  %v171_v17 = vld [vmem:[#allocation4 + $0x190] sm:$0xff]  ;;  %v593_v18 = vpack.c.bf16 %v176_v11, %v172_v10  ;;  %v178_v20 = vld [vmem:[#allocation4 + $0x1c8] sm:$0xff] }
  0x38   :  { %586 = vmatprep.subr.bf16.mxu1 %v585_v57  ;;  %v175_v19 = vld [vmem:[#allocation4 + $0x1b0] sm:$0xff]  ;;  %v182_v21 = vld [vmem:[#allocation4 + $0x1e8] sm:$0xff]  ;;  %v180_v22 = vld [vmem:[#allocation4 + $0x1d8] sm:$0xff]  ;;  %v563_v24 = vpack.c.bf16 %v173_v16, %v169_v15 }
  0x39   :  { %v184_v23 = vld [vmem:[#allocation4 + $0x1f8] sm:$0xff]  ;;  %v595_v25 = vpack.c.bf16 %v175_v19, %v171_v17  ;;  %v565_v26 = vpack.c.bf16 %v182_v21, %v178_v20  ;;  %v177_v27 = vld [vmem:[#allocation4 + $0x1c0] sm:$0xff]  ;;  %v179_v29 = vld [vmem:[#allocation4 + $0x1d0] sm:$0xff] }
  0x3a   :  { %556 = vmatpush1.bf16.msra.mxu0 %v555_v63  ;;  %v181_v28 = vld [vmem:[#allocation4 + $0x1e0] sm:$0xff]  ;;  %v597_v30 = vpack.c.bf16 %v184_v23, %v180_v22  ;;  %v183_v31 = vld [vmem:[#allocation4 + $0x1f0] sm:$0xff]  ;;  %v58_v32 = vld [vmem:[#allocation2 + $0x8] sm:$0xff] }
  0x3b   :  { %588 = vmatpush1.bf16.msra.mxu1 %v587_v1  ;;  %558 = vmatprep.subr.bf16.mxu0 %v557_v2  ;;  %v62_v33 = vld [vmem:[#allocation2 + $0x28] sm:$0xff]  ;;  %v60_v34 = vld [vmem:[#allocation2 + $0x18] sm:$0xff]  ;;  %v567_v36 = vpack.c.bf16 %v181_v28, %v177_v27  ;;  %v599_v37 = vpack.c.bf16 %v183_v31, %v179_v29  ;;  %v57_v39 = vld [vmem:[#allocation2] sm:$0xff] }
  0x3c   :  { %590 = vmatprep.subr.bf16.mxu1 %v589_v6  ;;  %v64_v35 = vld [vmem:[#allocation2 + $0x38] sm:$0xff]  ;;  %v601_v38 = vpack.c.bf16 %v62_v33, %v58_v32  ;;  %v61_v40 = vld [vmem:[#allocation2 + $0x20] sm:$0xff]  ;;  %v59_v41 = vld [vmem:[#allocation2 + $0x10] sm:$0xff] }
  0x3d   :  { %v633_v42 = vpack.c.bf16 %v64_v35, %v60_v34  ;;  %v63_v43 = vld [vmem:[#allocation2 + $0x30] sm:$0xff]  ;;  %v66_v44 = vld [vmem:[#allocation2 + $0x48] sm:$0xff]  ;;  %v68_v46 = vld [vmem:[#allocation2 + $0x58] sm:$0xff]  ;;  %v603_v49 = vpack.c.bf16 %v61_v40, %v57_v39 }
  0x3e   :  { %560 = vmatpush1.bf16.msra.mxu0 %v559_v12  ;;  %v70_v45 = vld [vmem:[#allocation2 + $0x68] sm:$0xff]  ;;  %v72_v47 = vld [vmem:[#allocation2 + $0x78] sm:$0xff]  ;;  %v55_v48 = vld [vmem:[%s840_s1] sm:$0xff]  ;;  %v635_v50 = vpack.c.bf16 %v63_v43, %v59_v41 }
  0x3f   :  { %592 = vmatpush1.bf16.msra.mxu1 %v591_v13  ;;  %562 = vmatprep.subr.bf16.mxu0 %v561_v14  ;;  %v605_v51 = vpack.c.bf16 %v70_v45, %v66_v44  ;;  %v65_v52 = vld [vmem:[#allocation2 + $0x40] sm:$0xff]  ;;  %v67_v54 = vld [vmem:[#allocation2 + $0x50] sm:$0xff]  ;;  %v637_v55 = vpack.c.bf16 %v72_v47, %v68_v46  ;;  %v74_v57 = vld [vmem:[#allocation2 + $0x88] sm:$0xff] }
  0x40   :  { %594 = vmatprep.subr.bf16.mxu1 %v593_v18  ;;  %v69_v53 = vld [vmem:[#allocation2 + $0x60] sm:$0xff]  ;;  %v71_v56 = vld [vmem:[#allocation2 + $0x70] sm:$0xff]  ;;  %v78_v58 = vld [vmem:[#allocation2 + $0xa8] sm:$0xff] }
  0x41   :  { %v76_v59 = vld [vmem:[#allocation2 + $0x98] sm:$0xff]  ;;  %v607_v61 = vpack.c.bf16 %v69_v53, %v65_v52  ;;  %v639_v62 = vpack.c.bf16 %v71_v56, %v67_v54  ;;  %v609_v63 = vpack.c.bf16 %v78_v58, %v74_v57  ;;  %v73_v1 = vld [vmem:[#allocation2 + $0x80] sm:$0xff]  ;;  %v75_v3 = vld [vmem:[#allocation2 + $0x90] sm:$0xff] }
  0x42   :  { %564 = vmatpush1.bf16.msra.mxu0 %v563_v24  ;;  %v80_v60 = vld [vmem:[#allocation2 + $0xb8] sm:$0xff]  ;;  %v77_v2 = vld [vmem:[#allocation2 + $0xa0] sm:$0xff]  ;;  %v79_v5 = vld [vmem:[#allocation2 + $0xb0] sm:$0xff] }
  0x43   :  { %596 = vmatpush1.bf16.msra.mxu1 %v595_v25  ;;  %566 = vmatprep.subr.bf16.mxu0 %v565_v26  ;;  %v641_v4 = vpack.c.bf16 %v80_v60, %v76_v59  ;;  %v82_v6 = vld [vmem:[#allocation2 + $0xc8] sm:$0xff]  ;;  %v84_v8 = vld [vmem:[#allocation2 + $0xd8] sm:$0xff]  ;;  %v611_v10 = vpack.c.bf16 %v77_v2, %v73_v1  ;;  %v643_v11 = vpack.c.bf16 %v79_v5, %v75_v3  ;;  %v81_v13 = vld [vmem:[#allocation2 + $0xc0] sm:$0xff]  ;;  %v471_v5 = vlaneseq }
  0x44   :  { %598 = vmatprep.subr.bf16.mxu1 %v597_v30  ;;  %v86_v7 = vld [vmem:[#allocation2 + $0xe8] sm:$0xff]  ;;  %v88_v9 = vld [vmem:[#allocation2 + $0xf8] sm:$0xff]  ;;  %v85_v14 = vld [vmem:[#allocation2 + $0xe0] sm:$0xff] }
  0x45   :  { %v613_v12 = vpack.c.bf16 %v86_v7, %v82_v6  ;;  %v83_v15 = vld [vmem:[#allocation2 + $0xd0] sm:$0xff]  ;;  %v645_v16 = vpack.c.bf16 %v88_v9, %v84_v8  ;;  %v90_v18 = vld [vmem:[#allocation2 + $0x108] sm:$0xff]  ;;  %v92_v20 = vld [vmem:[#allocation2 + $0x118] sm:$0xff]  ;;  %v615_v22 = vpack.c.bf16 %v85_v14, %v81_v13  ;;  %v472_v6 = vshrl.u32 %v471_v5, 7 }
  0x46   :  { %568 = vmatpush1.bf16.msra.mxu0 %v567_v36  ;;  %v87_v17 = vld [vmem:[#allocation2 + $0xf0] sm:$0xff]  ;;  %v94_v19 = vld [vmem:[#allocation2 + $0x128] sm:$0xff]  ;;  %v96_v21 = vld [vmem:[#allocation2 + $0x138] sm:$0xff] }
  0x47   :  { %600 = vmatpush1.bf16.msra.mxu1 %v599_v37  ;;  %602 = vmatprep.subr.bf16.mxu0 %v601_v38  ;;  %v617_v23 = vpack.c.bf16 %v94_v19, %v90_v18  ;;  %v89_v24 = vld [vmem:[#allocation2 + $0x100] sm:$0xff]  ;;  %v91_v26 = vld [vmem:[#allocation2 + $0x110] sm:$0xff]  ;;  %v649_v27 = vpack.c.bf16 %v96_v21, %v92_v20  ;;  %v98_v29 = vld [vmem:[#allocation2 + $0x148] sm:$0xff]  ;;  %v473_v7 = vsub.s32 0, %v472_v6  ;;  %v477_v9 = vsub.s32 1, %v472_v6 }
  0x48   :  { %634 = vmatprep.subr.bf16.mxu1 %v633_v42  ;;  %v93_v25 = vld [vmem:[#allocation2 + $0x120] sm:$0xff]  ;;  %v95_v28 = vld [vmem:[#allocation2 + $0x130] sm:$0xff]  ;;  %v102_v30 = vld [vmem:[#allocation2 + $0x168] sm:$0xff] }
  0x49   :  { %250 = vmatmul.mubr.f32.vlgmr.msra.gmra.mrb[0].mxu0 %v55_v48  ;;  %v100_v31 = vld [vmem:[#allocation2 + $0x158] sm:$0xff]  ;;  %v619_v33 = vpack.c.bf16 %v93_v25, %v89_v24  ;;  %v651_v34 = vpack.c.bf16 %v95_v28, %v91_v26  ;;  %v621_v35 = vpack.c.bf16 %v102_v30, %v98_v29  ;;  %v97_v36 = vld [vmem:[#allocation2 + $0x140] sm:$0xff]  ;;  %v99_v38 = vld [vmem:[#allocation2 + $0x150] sm:$0xff]  ;;  %v481_v24 = vsub.s32 2, %v472_v6 }
  0x4a   :  { %321 = vmatmul.mubr.f32.vlgmr.msra.gmra.mrb[0].mxu1 %v55_v48  ;;  %604 = vmatpush1.bf16.msra.mxu0 %v603_v49  ;;  %v104_v32 = vld [vmem:[#allocation2 + $0x178] sm:$0xff]  ;;  %v101_v37 = vld [vmem:[#allocation2 + $0x160] sm:$0xff]  ;;  %v103_v40 = vld [vmem:[#allocation2 + $0x170] sm:$0xff] }
  0x4b   :  { %636 = vmatpush1.bf16.msra.mxu1 %v635_v50  ;;  %606 = vmatprep.subr.bf16.mxu0 %v605_v51  ;;  %v653_v39 = vpack.c.bf16 %v104_v32, %v100_v31  ;;  %v106_v41 = vld [vmem:[#allocation2 + $0x188] sm:$0xff]  ;;  %v108_v43 = vld [vmem:[#allocation2 + $0x198] sm:$0xff]  ;;  %v623_v45 = vpack.c.bf16 %v101_v37, %v97_v36  ;;  %v655_v46 = vpack.c.bf16 %v103_v40, %v99_v38  ;;  %v105_v48 = vld [vmem:[#allocation2 + $0x180] sm:$0xff] }
  0x4c   :  { %638 = vmatprep.subr.bf16.mxu1 %v637_v55  ;;  %391 = vmatprep.mubr.f32.mxu0 %v744_v0  ;;  %v110_v42 = vld [vmem:[#allocation2 + $0x1a8] sm:$0xff]  ;;  %v112_v44 = vld [vmem:[#allocation2 + $0x1b8] sm:$0xff]  ;;  %v109_v49 = vld [vmem:[#allocation2 + $0x1a0] sm:$0xff] }
  0x4d   :  { %462 = vmatprep.mubr.f32.mxu1 %v744_v0  ;;  %v647_v0 = vpack.c.bf16 %v87_v17, %v83_v15  ;;  %v625_v47 = vpack.c.bf16 %v110_v42, %v106_v41  ;;  %v107_v50 = vld [vmem:[#allocation2 + $0x190] sm:$0xff]  ;;  %v657_v51 = vpack.c.bf16 %v112_v44, %v108_v43  ;;  %v114_v53 = vld [vmem:[#allocation2 + $0x1c8] sm:$0xff]  ;;  %v116_v55 = vld [vmem:[#allocation2 + $0x1d8] sm:$0xff]  ;;  %v627_v57 = vpack.c.bf16 %v109_v49, %v105_v48 }
  0x4e   :  { %608 = vmatpush1.bf16.msra.mxu0 %v607_v61  ;;  %v111_v52 = vld [vmem:[#allocation2 + $0x1b0] sm:$0xff]  ;;  %v118_v54 = vld [vmem:[#allocation2 + $0x1e8] sm:$0xff]  ;;  %v120_v56 = vld [vmem:[#allocation2 + $0x1f8] sm:$0xff] }
  0x4f   :  { %640 = vmatpush1.bf16.msra.mxu1 %v639_v62  ;;  %610 = vmatprep.subr.bf16.mxu0 %v609_v63  ;;  %v659_v58 = vpack.c.bf16 %v111_v52, %v107_v50  ;;  %v629_v59 = vpack.c.bf16 %v118_v54, %v114_v53  ;;  %v113_v60 = vld [vmem:[#allocation2 + $0x1c0] sm:$0xff]  ;;  %v661_v62 = vpack.c.bf16 %v120_v56, %v116_v55  ;;  %v115_v63 = vld [vmem:[#allocation2 + $0x1d0] sm:$0xff] }
  0x50   :  { %642 = vmatprep.subr.bf16.mxu1 %v641_v4  ;;  %v117_v61 = vld [vmem:[#allocation2 + $0x1e0] sm:$0xff]  ;;  %v119_v1 = vld [vmem:[#allocation2 + $0x1f0] sm:$0xff] }
  0x51   :  { %v631_v2 = vpack.c.bf16 %v117_v61, %v113_v60  ;;  %v663_v3 = vpack.c.bf16 %v119_v1, %v115_v63  ;;  %v54_v4 = vld [vmem:[%s839_s0] sm:$0xff] }
  0x52   :  { %612 = vmatpush1.bf16.msra.mxu0 %v611_v10  ;;  %v469_v8 = vld [vmem:[%s844_s5] sm:$0xf] }
  0x53   :  { %644 = vmatpush1.bf16.msra.mxu1 %v643_v11  ;;  %614 = vmatprep.subr.bf16.mxu0 %v613_v12  ;;  %v474_v10 = vrot.slane %v469_v8, %v473_v7  ;;  %v478_v11 = vrot.slane %v469_v8, %v477_v9  ;;  %v485_v12 = vsub.s32 3, %v472_v6  ;;  %v482_v26 = vrot.slane %v469_v8, %v481_v24 }
  0x54   :  { %646 = vmatprep.subr.bf16.mxu1 %v645_v16 }
  0x55   :  { %v486_v19 = vrot.slane %v469_v8, %v485_v12 }
  0x56   :  { %616 = vmatpush1.bf16.msra.mxu0 %v615_v22 }
  0x57   :  { %648 = vmatpush1.bf16.msra.mxu1 %v647_v0  ;;  %618 = vmatprep.subr.bf16.mxu0 %v617_v23 }
  0x58   :  { %650 = vmatprep.subr.bf16.mxu1 %v649_v27 }
  0x5a   :  { %620 = vmatpush1.bf16.msra.mxu0 %v619_v33 }
  0x5b   :  { %652 = vmatpush1.bf16.msra.mxu1 %v651_v34  ;;  %622 = vmatprep.subr.bf16.mxu0 %v621_v35  ;;  %v56_v35 = vld [vmem:[%s841_s2] sm:$0xff] }
  0x5c   :  { %654 = vmatprep.subr.bf16.mxu1 %v653_v39 }
  0x5e   :  { %624 = vmatpush1.bf16.msra.mxu0 %v623_v45 }
  0x5f   :  { %656 = vmatpush1.bf16.msra.mxu1 %v655_v46  ;;  %626 = vmatprep.subr.bf16.mxu0 %v625_v47 }
  0x60   :  { %658 = vmatprep.subr.bf16.mxu1 %v657_v51 }
  0x62   :  { %628 = vmatpush1.bf16.msra.mxu0 %v627_v57 }
  0x63   :  { %660 = vmatpush1.bf16.msra.mxu1 %v659_v58  ;;  %630 = vmatprep.subr.bf16.mxu0 %v629_v59 }
  0x64   :  { %662 = vmatprep.subr.bf16.mxu1 %v661_v62 }
  0x66   :  { %632 = vmatpush1.bf16.msra.mxu0 %v631_v2 }
  0x67   :  { %664 = vmatpush1.bf16.msra.mxu1 %v663_v3 }
  0x69   :  { %392 = vmatmul.mubr.f32.vlgmr.msra.gmra.mrb[0].mxu0 %v54_v4 }
  0x6a   :  { %463 = vmatmul.mubr.f32.vlgmr.msra.gmra.mrb[0].mxu1 %v54_v4 }
 0x13c   :  { %v393_v13 = vpop.f32.mrb[0].mxu0 }
 0x13d   :  { %v491_v14 = vadd.f32 %v474_v10, %v393_v13  ;;  %v464_v15 = vpop.f32.mrb[0].mxu1  ;;  %v395_v16 = vpop.f32.mrb[1].mxu0 }
 0x13e   :  { %v492_v17 = vadd.f32 %v478_v11, %v395_v16  ;;  %v466_v18 = vpop.f32.mrb[1].mxu1  ;;  %v493_v28 = vadd.f32 %v482_v26, %v464_v15 }
 0x13f   :  { %v495_v20 = vsub.f32 0.0, %v491_v14  ;;  %v494_v23 = vadd.f32 %v486_v19, %v466_v18 }
 0x140   :  { %v501_v21 = vsub.f32 0.0, %v492_v17 }
 0x141   :  { %v496_v22 = vmul.f32 1.442695, %v495_v20  ;;  %v508_v25 = vsub.f32 0.0, %v494_v23 }
 0x142   :  { %v502_v0 = vmul.f32 1.442695, %v501_v21 }
 0x143   :  { %674 = vpow2.f32 %v496_v22  ;;  %v509_v27 = vmul.f32 1.442695, %v508_v25 }
 0x144   :  { %676 = vpow2.f32 %v502_v0 }
 0x145   :  { %678 = vpow2.f32 %v509_v27 }
 0x146   :  { %680 = vtanh.f32 %v493_v28 }
 0x14d   :  { %v675_v29 = vpop.eup %674 }
 0x14e   :  { %v677_v30 = vpop.eup %676  ;;  %v498_v31 = vadd.f32 1.0, %v675_v29 }
 0x14f   :  { %v504_v32 = vadd.f32 1.0, %v677_v30  ;;  %v679_v33 = vpop.eup %678 }
 0x150   :  { %682 = vrcp.f32 %v498_v31  ;;  %v681_v34 = vpop.eup %680  ;;  %v511_v39 = vadd.f32 1.0, %v679_v33 }
 0x151   :  { %684 = vrcp.f32 %v504_v32 }
 0x152   :  { %686 = vrcp.f32 %v511_v39 }
 0x15a   :  { %v683_v36 = vpop.eup %682 }
 0x15b   :  { %v685_v37 = vpop.eup %684  ;;  %v515_v38 = vmul.f32 %v683_v36, %v681_v34 }
 0x15c   :  { %v514_v40 = vmul.f32 %v685_v37, %v56_v35  ;;  %v687_v42 = vpop.eup %686 }
 0x15e   :  { %v516_v41 = vadd.f32 %v515_v38, %v514_v40 }
 0x160   :  { %688 = vtanh.f32 %v516_v41  ;;  %520 = vst [vmem:[%s847_s8] sm:$0xff] %v516_v41 }
 0x16a   :  { %v689_v43 = vpop.eup %688 }
 0x16b   :  { %v518_v44 = vmul.f32 %v689_v43, %v687_v42 }
 0x16d   :  { %519 = vst [vmem:[%s846_s7] sm:$0xff] %v518_v44  ;;  %690 = vtanh.f32 %v518_v44 }
 0x177   :  { %v691_v45 = vpop.eup %690 }
 0x178   :  { %522 = vst [vmem:[%s845_s6] sm:$0xff] %v691_v45 }
 0x179   :  { %535 = vsyncpa [#allocation3], 1 }
 0x17a   :  { %536 = vsyncpa [#allocation5], 1 }

</bundles_post_ra>
